<compile_context>
chip_gen: v5e
topology: v5e:2x2
jax: 0.10.0
libtpu: 0.0.40
codegen_flags: <defaults>
</compile_context>

<pallas_src>
import jax
import jax.numpy as jnp
from jax.experimental import pallas as pl
from jax.experimental.pallas import tpu as pltpu

CHANNELS = 3
NUM_FILTERS = 10
KSIZE = 7

NUM_SPLITS = 2       # leading 'parallel' grid axis (v7x megacore; harmless on v5e/v6e)
TILE_M_MAX = 8192    # lane-dense patch-column tile: 160 x 8192 bf16 = 2.5 MiB / buffer
LANES = 128
K_PAD = 16           # filters padded onto sublanes (bf16 sublane packing = 16)


def _cdiv(a, b):
    return -(-a // b)


def _round_up(a, b):
    return _cdiv(a, b) * b


def _lower_level_kernel(p_ref, f_ref, s2_ref, w_ref, out_ref):
    # Accumulation assumes the inner axis sweeps contiguously for a fixed split
    # (row-major grid traversal; the 'parallel' leading axis is sharded whole
    # per core), so init-at-i==0 / resident-output accumulation is safe.
    i = pl.program_id(1)

    @pl.when(i == 0)
    def _():
        out_ref[...] = jnp.zeros_like(out_ref)

    # Transposed product: z^T = f^T (16 x 160) @ p^T (160 x tile_m) -> (16, tile_m).
    # K lives on sublanes, so only 16 rows of EUP/VPU work follow the matmul.
    z = jnp.dot(f_ref[...], p_ref[...], preferred_element_type=jnp.float32)
    rho = jnp.sqrt(z * z + s2_ref[...])          # smoothed |.| expert potential
    # One cross-lane (XLU) reduction per step; partial broadcast-accumulated
    # into the resident f32 (16, 128) output block (every lane holds the sum).
    out_ref[...] += jnp.sum(rho * w_ref[...], axis=1, keepdims=True)


def _im2col_t(x, kh, kw):
    """x: [N, C, H, W] -> transposed patch matrix [C*kh*kw, N*OH*OW] (wrapper glue)."""
    n, c, h, w = x.shape
    oh, ow = h - kh + 1, w - kw + 1
    cols = [x[:, :, dy:dy + oh, dx:dx + ow] for dy in range(kh) for dx in range(kw)]
    p = jnp.stack(cols, axis=2)            # [N, C, kh*kw, OH, OW]
    p = p.transpose(1, 2, 0, 3, 4)         # [C, kh*kw, N, OH, OW]
    return p.reshape(c * kh * kw, n * oh * ow)


def lower_level_forward(x, measurement, filters, smoothing, weights):
    """Scalar loss = 0.5*||x - y||^2 / N + sum_k w_k * sum sqrt((K_k*x)^2 + s_k^2)."""
    n, c, h, w = x.shape
    k = filters.shape[0]
    oh, ow = h - KSIZE + 1, w - KSIZE + 1
    m = n * oh * ow
    d = c * KSIZE * KSIZE

    d_pad = _round_up(d, 16)               # 147 -> 160 (bf16 sublane packing only)

    # Lane tiling of the patch-column dim (must be a multiple of 128).
    tile_m = min(TILE_M_MAX, _round_up(_cdiv(m, NUM_SPLITS), LANES))
    inner_steps = _cdiv(m, NUM_SPLITS * tile_m)
    tile_m = _round_up(_cdiv(m, NUM_SPLITS * inner_steps), LANES)   # shrink-to-fit
    m_pad = NUM_SPLITS * inner_steps * tile_m

    # Transposed im2col in bf16 (wrapper glue).
    # TODO(synk): build patch tiles in-kernel from a haloed x slab to remove the
    # remaining ~7x HBM read inflation of this stream.
    patches_t = _im2col_t(x.astype(jnp.bfloat16), KSIZE, KSIZE)     # [147, m]
    patches_t = jnp.pad(patches_t, ((0, d_pad - d), (0, m_pad - m)))

    f_t = jnp.pad(filters.reshape(k, d).astype(jnp.bfloat16),
                  ((0, K_PAD - k), (0, d_pad - d)))                 # [16, 160]
    s2 = jnp.pad((smoothing.astype(jnp.float32) ** 2).reshape(k, 1),
                 ((0, K_PAD - k), (0, 0)))                          # [16, 1]
    w2 = jnp.pad(weights.astype(jnp.float32).reshape(k, 1),
                 ((0, K_PAD - k), (0, 0)))                          # [16, 1]

    out = pl.pallas_call(
        _lower_level_kernel,
        out_shape=jax.ShapeDtypeStruct((NUM_SPLITS * K_PAD, LANES), jnp.float32),
        grid=(NUM_SPLITS, inner_steps),
        in_specs=[
            pl.BlockSpec((d_pad, tile_m), lambda p, i: (0, p * inner_steps + i)),
            pl.BlockSpec((K_PAD, d_pad), lambda p, i: (0, 0)),
            pl.BlockSpec((K_PAD, 1), lambda p, i: (0, 0)),
            pl.BlockSpec((K_PAD, 1), lambda p, i: (0, 0)),
        ],
        out_specs=pl.BlockSpec((K_PAD, LANES), lambda p, i: (p, 0)),
        compiler_params=pltpu.CompilerParams(
            dimension_semantics=("parallel", "arbitrary"),
            vmem_limit_bytes=32 * 1024 * 1024),
        cost_estimate=pl.CostEstimate(
            flops=int(2 * m * d * k),
            transcendentals=int(m * k),
            bytes_accessed=int(d_pad * m_pad * 2 + K_PAD * d_pad * 2
                               + 2 * K_PAD * 4 + NUM_SPLITS * K_PAD * LANES * 4)),
    )(patches_t, f_t, s2, w2)

    # Every lane of `out` holds the same per-(split, filter) partial sum.
    reg = jnp.sum(out[:, 0])
    # Analytic correction: each zero-padded patch column contributed
    # sum_k w_k * sqrt(s_k^2) (z == 0 there); padded filters contribute 0.
    reg = reg - (m_pad - m) * jnp.sum(weights * jnp.sqrt(smoothing ** 2))

    # Data fidelity in plain XLA (tiny vs. the patch stream; A = identity).
    df = 0.5 * jnp.sum((x - measurement) ** 2) / measurement.shape[0]
    return df + reg


def lower_level_reference(x, y, filters, smoothing, weights):
    """Pure-JAX reference (mirrors the PyTorch forward)."""
    z = jax.lax.conv_general_dilated(
        x, filters, window_strides=(1, 1), padding="VALID",
        dimension_numbers=("NCHW", "OIHW", "NCHW"))
    rho = jnp.sqrt(z * z + smoothing.reshape(1, -1, 1, 1) ** 2)
    reg = jnp.sum(rho * weights.reshape(1, -1, 1, 1))
    df = 0.5 * jnp.sum((x - y) ** 2) / y.shape[0]
    return df + reg


if __name__ == "__main__":
    key = jax.random.PRNGKey(0)
    kx, ky, kf = jax.random.split(key, 3)

    N, C, H, W = 2, CHANNELS, 16, 16
    x = jax.random.normal(kx, (N, C, H, W), dtype=jnp.float32)
    measurement = jax.random.normal(ky, (N, C, H, W), dtype=jnp.float32)

    # Deterministic "learned" parameters (shapes implied by FoE(3, 10, 7, ...)).
    filters = 0.1 * jax.random.normal(kf, (NUM_FILTERS, C, KSIZE, KSIZE), dtype=jnp.float32)
    smoothing = jnp.linspace(0.01, 0.1, NUM_FILTERS, dtype=jnp.float32)   # learnable_smoothing
    weights = jnp.linspace(0.05, 0.15, NUM_FILTERS, dtype=jnp.float32)    # learnable_weights

    loss = jax.jit(lower_level_forward)(x, measurement, filters, smoothing, weights)
    jax.block_until_ready(loss)

    ref = lower_level_reference(x, measurement, filters, smoothing, weights)
    assert jnp.allclose(loss, ref, rtol=5e-3, atol=1e-2), (loss, ref)

    print("KERNEL_OK")
</pallas_src>

<mosaic_0001>
module attributes {stable_mosaic.version = 11 : i64} {
  func.func @_lower_level_kernel(%arg0: i32, %arg1: i32, %arg2: memref<160x128xbf16, #tpu.memory_space<vmem>>, %arg3: memref<16x160xbf16, #tpu.memory_space<vmem>>, %arg4: memref<16x1xf32, #tpu.memory_space<vmem>>, %arg5: memref<16x1xf32, #tpu.memory_space<vmem>>, %arg6: memref<16x128xf32, #tpu.memory_space<vmem>>) attributes {dimension_semantics = [#tpu.dimension_semantics<parallel>, #tpu.dimension_semantics<arbitrary>], iteration_bounds = array<i64: 2, 1>, scalar_prefetch = 0 : i64, scratch_operands = 0 : i64, tpu.core_type = #tpu.core_type<tc>, window_params = [{transform_indices = @transform_0, window_bounds = array<i64: 160, 128>}, {pipeline_mode = #tpu.pipeline_mode<synchronous>, transform_indices = @transform_1, window_bounds = array<i64: 16, 160>}, {pipeline_mode = #tpu.pipeline_mode<synchronous>, transform_indices = @transform_2, window_bounds = array<i64: 16, 1>}, {pipeline_mode = #tpu.pipeline_mode<synchronous>, transform_indices = @transform_3, window_bounds = array<i64: 16, 1>}, {transform_indices = @transform_4, window_bounds = array<i64: 16, 128>}]} {
    %c0_i32 = arith.constant 0 : i32
    %0 = arith.cmpi eq, %arg1, %c0_i32 : i32
    %1 = arith.extui %0 : i1 to i32
    %c0_i32_0 = arith.constant 0 : i32
    %2 = arith.cmpi ne, %1, %c0_i32_0 : i32
    scf.if %2 {
      %cst_13 = arith.constant 0.000000e+00 : f32
      %20 = vector.broadcast %cst_13 : f32 to vector<16x128xf32>
      %c0_14 = arith.constant 0 : index
      %c0_15 = arith.constant 0 : index
      %21 = vector.load %arg6[%c0_14, %c0_15] : memref<16x128xf32, #tpu.memory_space<vmem>>, vector<16x128xf32>
      tpu.vector_store %arg6[%c0_14, %c0_15], %20 {strides = array<i32>} : memref<16x128xf32, #tpu.memory_space<vmem>>, vector<16x128xf32>,
    } else {
    }
    %c0 = arith.constant 0 : index
    %c0_1 = arith.constant 0 : index
    %3 = vector.load %arg3[%c0, %c0_1] : memref<16x160xbf16, #tpu.memory_space<vmem>>, vector<16x160xbf16>
    %c0_2 = arith.constant 0 : index
    %c0_3 = arith.constant 0 : index
    %4 = vector.load %arg2[%c0_2, %c0_3] : memref<160x128xbf16, #tpu.memory_space<vmem>>, vector<160x128xbf16>
    %cst = arith.constant dense<0.000000e+00> : vector<16x128xf32>
    %5 = tpu.matmul %3, %4, %cst {dimension_numbers = #tpu.dot_dimension_numbers<[1], [0], [0], [1], [0, 0, 1, 1], [], []>} : vector<16x160xbf16>, vector<160x128xbf16>, vector<16x128xf32> -> vector<16x128xf32>
    %6 = arith.mulf %5, %5 : vector<16x128xf32>
    %c0_4 = arith.constant 0 : index
    %c0_5 = arith.constant 0 : index
    %7 = vector.load %arg4[%c0_4, %c0_5] : memref<16x1xf32, #tpu.memory_space<vmem>>, vector<16x1xf32>
    %8 = vector.broadcast %7 : vector<16x1xf32> to vector<16x128xf32>
    %9 = arith.addf %6, %8 : vector<16x128xf32>
    %10 = math.sqrt %9 : vector<16x128xf32>
    %c0_6 = arith.constant 0 : index
    %c0_7 = arith.constant 0 : index
    %11 = vector.load %arg6[%c0_6, %c0_7] : memref<16x128xf32, #tpu.memory_space<vmem>>, vector<16x128xf32>
    %c0_8 = arith.constant 0 : index
    %c0_9 = arith.constant 0 : index
    %12 = vector.load %arg5[%c0_8, %c0_9] : memref<16x1xf32, #tpu.memory_space<vmem>>, vector<16x1xf32>
    %13 = vector.broadcast %12 : vector<16x1xf32> to vector<16x128xf32>
    %14 = arith.mulf %10, %13 : vector<16x128xf32>
    %cst_10 = arith.constant dense<0.000000e+00> : vector<16xf32>
    %15 = vector.multi_reduction <add>, %14, %cst_10 [1] : vector<16x128xf32> to vector<16xf32>
    %16 = vector.shape_cast %15 : vector<16xf32> to vector<16x1xf32>
    %17 = vector.broadcast %16 : vector<16x1xf32> to vector<16x128xf32>
    %18 = arith.addf %11, %17 : vector<16x128xf32>
    %c0_11 = arith.constant 0 : index
    %c0_12 = arith.constant 0 : index
    %19 = vector.load %arg6[%c0_11, %c0_12] : memref<16x128xf32, #tpu.memory_space<vmem>>, vector<16x128xf32>
    tpu.vector_store %arg6[%c0_11, %c0_12], %18 {strides = array<i32>} : memref<16x128xf32, #tpu.memory_space<vmem>>, vector<16x128xf32>,
    return
  }
  func.func @transform_0(%arg0: i32, %arg1: i32) -> (i32, i32) {
    %c1_i32 = arith.constant 1 : i32
    %0 = arith.muli %arg0, %c1_i32 : i32
    %1 = arith.addi %0, %arg1 : i32
    %c0_i32 = arith.constant 0 : i32
    %c0_i32_0 = arith.constant 0 : i32
    return %c0_i32, %1 : i32, i32
  }
  func.func @transform_1(%arg0: i32, %arg1: i32) -> (i32, i32) {
    %c0_i32 = arith.constant 0 : i32
    %c0_i32_0 = arith.constant 0 : i32
    %c0_i32_1 = arith.constant 0 : i32
    return %c0_i32, %c0_i32_0 : i32, i32
  }
  func.func @transform_2(%arg0: i32, %arg1: i32) -> (i32, i32) {
    %c0_i32 = arith.constant 0 : i32
    %c0_i32_0 = arith.constant 0 : i32
    %c0_i32_1 = arith.constant 0 : i32
    return %c0_i32, %c0_i32_0 : i32, i32
  }
  func.func @transform_3(%arg0: i32, %arg1: i32) -> (i32, i32) {
    %c0_i32 = arith.constant 0 : i32
    %c0_i32_0 = arith.constant 0 : i32
    %c0_i32_1 = arith.constant 0 : i32
    return %c0_i32, %c0_i32_0 : i32, i32
  }
  func.func @transform_4(%arg0: i32, %arg1: i32) -> (i32, i32) {
    %c0_i32 = arith.constant 0 : i32
    %c0_i32_0 = arith.constant 0 : i32
    return %arg0, %c0_i32 : i32, i32
  }
}

</mosaic_0001>

<bundles_post_ra>
// kernel: lower_level_forward.1
= control target key start
LH: loop header
LB: loop body
LE: loop exit
PB: predicated region body
PF: predicated region fallthrough
CT: control target
= control target key end

     0   :  { %s788_s15 = smov 0   ;;  %s790_s16 = smov 0   ;;  %s940_s0 = inlined_call_operand.vmem [shape: bf16[160,256], index: 0, kind: input, shape index: {}]   ;;  %s941_s1 = inlined_call_operand.vmem [shape: bf16[16,160], index: 1, kind: input, shape index: {}]   ;;  %s942_s2 = inlined_call_operand.vmem [shape: f32[16,1], index: 2, kind: input, shape index: {}]   ;;  %s943_s3 = inlined_call_operand.vmem [shape: f32[16,1], index: 3, kind: input, shape index: {}]   ;;  %s944_s4 = inlined_call_operand.vmem [shape: f32[32,128], index: 4, kind: output, shape index: {}]  }
   0x1   :  { %s792_s17 = smov 0   ;;  %s794_s18 = smov 0  }
   0x2   :  { %s796_s19 = smov 0  }
   0x3 LB: > { %s26_s20 = sadd.s32 1, %s755_s18  ;;  %p42_p1 = scmp.ne.s32.totalorder %s747_s16, %s743_s15  ;;  %s759_s19 = sphi %s796_s19, %s14_s19   ;;  %s755_s18 = sphi %s794_s18, %s948_s18   ;;  %s751_s17 = sphi %s792_s17, %s947_s17   ;;  %s747_s16 = sphi %s790_s16, %s946_s16   ;;  %s743_s15 = sphi %s788_s15, %s945_s15  }
   0x4   : > { %p28_p0 = scmp.ge.s32.totalorder %s26_s20, 2  ;;  %p43_p2 = scmp.eq.s32.totalorder %s759_s19, 0 }
   0x5   : > { %s35_s22 = sadd.s32 1, %s747_s16  ;;  %p603_p5 = scmp.ge.s32.totalorder %s759_s19, 2 }
   0x6   : > { %s950_s20 = smov (%p28_p0, %s26_s20), 0  ;;  %p44_p3 = por %p43_p2, %p42_p1 }
   0x7   : > { %s32_s21 = ssub.s32 %s755_s18, %s950_s20  ;;  %166 = sbr.rel (%p603_p5) target bundleno = 37 (0x25), region = 28 }
   0x8   : > { %p33_p4 = scmp.eq.s32.totalorder %s32_s21, 0 }
   0xa   : > { %s823_s23 = scalar_select %p33_p4, %s747_s16, %s35_s22  }
   0xc   : > { %169 = sbr.rel (!%p44_p3) target bundleno = 37 (0x25), region = 32  ;;  %s171_s24 = sand.u32 (%p44_p3), 1, %s747_s16  }
   0xd   : > { %s604_s25 = sshll.u32 (%p44_p3), %s755_s18, 2  ;;  %s671_s26 = smul.u32 (%p44_p3), 80, %s171_s24 }
   0xe   : > { %s831_s29 = scalar_lea.vmem (%p44_p3), %s940_s0, %s604_s25 }
   0xf   : > { %v193_v0 = vld [vmem:[%s831_s29] sm:$0xf] (%p44_p3)  ;;  %v195_v1 = vld [vmem:[%s831_s29 + $0x8] sm:$0xf] (%p44_p3)  ;;  %v197_v2 = vld [vmem:[%s831_s29 + $0x10] sm:$0xf] (%p44_p3) }
  0x10   : > { %s836_s30 = scalar_lea.vmem (%p44_p3), [#allocation2], %s671_s26  ;;  %v199_v3 = vld [vmem:[%s831_s29 + $0x18] sm:$0xf] (%p44_p3)  ;;  %v201_v4 = vld [vmem:[%s831_s29 + $0x20] sm:$0xf] (%p44_p3) }
  0x11   : > { %194 = vst [vmem:[%s836_s30] sm:$0xf] %v193_v0  ;;  %v203_v5 = vld [vmem:[%s831_s29 + $0x28] sm:$0xf]  ;;  %v205_v6 = vld [vmem:[%s831_s29 + $0x30] sm:$0xf] }
  0x12   : > { %196 = vst [vmem:[%s836_s30 + $0x4] sm:$0xf] %v195_v1  ;;  %v207_v7 = vld [vmem:[%s831_s29 + $0x38] sm:$0xf]  ;;  %v209_v8 = vld [vmem:[%s831_s29 + $0x40] sm:$0xf] }
  0x13   : > { %198 = vst [vmem:[%s836_s30 + $0x8] sm:$0xf] %v197_v2  ;;  %v211_v9 = vld [vmem:[%s831_s29 + $0x48] sm:$0xf]  ;;  %v213_v10 = vld [vmem:[%s831_s29 + $0x50] sm:$0xf] }
  0x14   : > { %200 = vst [vmem:[%s836_s30 + $0xc] sm:$0xf] %v199_v3  ;;  %v215_v11 = vld [vmem:[%s831_s29 + $0x58] sm:$0xf]  ;;  %v217_v12 = vld [vmem:[%s831_s29 + $0x60] sm:$0xf] }
  0x15   : > { %202 = vst [vmem:[%s836_s30 + $0x10] sm:$0xf] %v201_v4  ;;  %v219_v13 = vld [vmem:[%s831_s29 + $0x68] sm:$0xf]  ;;  %v221_v14 = vld [vmem:[%s831_s29 + $0x70] sm:$0xf] }
  0x16   : > { %204 = vst [vmem:[%s836_s30 + $0x14] sm:$0xf] %v203_v5  ;;  %v223_v15 = vld [vmem:[%s831_s29 + $0x78] sm:$0xf]  ;;  %v225_v16 = vld [vmem:[%s831_s29 + $0x80] sm:$0xf] }
  0x17   : > { %206 = vst [vmem:[%s836_s30 + $0x18] sm:$0xf] %v205_v6  ;;  %v227_v17 = vld [vmem:[%s831_s29 + $0x88] sm:$0xf]  ;;  %v229_v18 = vld [vmem:[%s831_s29 + $0x90] sm:$0xf] }
  0x18   : > { %208 = vst [vmem:[%s836_s30 + $0x1c] sm:$0xf] %v207_v7  ;;  %v231_v19 = vld [vmem:[%s831_s29 + $0x98] sm:$0xf] }
  0x19   : > { %210 = vst [vmem:[%s836_s30 + $0x20] sm:$0xf] %v209_v8 }
  0x1a   : > { %212 = vst [vmem:[%s836_s30 + $0x24] sm:$0xf] %v211_v9 }
  0x1b   : > { %214 = vst [vmem:[%s836_s30 + $0x28] sm:$0xf] %v213_v10 }
  0x1c   : > { %216 = vst [vmem:[%s836_s30 + $0x2c] sm:$0xf] %v215_v11 }
  0x1d   : > { %218 = vst [vmem:[%s836_s30 + $0x30] sm:$0xf] %v217_v12 }
  0x1e   : > { %220 = vst [vmem:[%s836_s30 + $0x34] sm:$0xf] %v219_v13 }
  0x1f   : > { %222 = vst [vmem:[%s836_s30 + $0x38] sm:$0xf] %v221_v14 }
  0x20   : > { %224 = vst [vmem:[%s836_s30 + $0x3c] sm:$0xf] %v223_v15 }
  0x21   : > { %226 = vst [vmem:[%s836_s30 + $0x40] sm:$0xf] %v225_v16 }
  0x22   : > { %228 = vst [vmem:[%s836_s30 + $0x44] sm:$0xf] %v227_v17 }
  0x23   : > { %230 = vst [vmem:[%s836_s30 + $0x48] sm:$0xf] %v229_v18 }
  0x24   : > { %232 = vst [vmem:[%s836_s30 + $0x4c] sm:$0xf] %v231_v19 }
  0x25 PF: > { %p605_p6 = scmp.ge.s32.totalorder %s759_s19, 1  ;;  %p295_p7 = scmp.lt.s32.totalorder %s759_s19, 3 }
  0x27   : > { %p296_p8 = pnand %p605_p6, %p295_p7 }
  0x28   : > { %s302_s5 = sand.u32 (!%p296_p8), 1, %s743_s15   ;;  %s606_s30 = sshll.u32 (!%p296_p8), %s751_s17, 1 }
  0x29   : > { %299 = sbr.rel (%p296_p8) target bundleno = 358 (0x166), region = 73  ;;  %p329_p9 = scmp.lt.s32.totalorder (!%p296_p8), %s606_s30, 3 }
  0x2a   : > { %s672_s6 = smul.u32 (!%p296_p8), 80, %s302_s5 }
  0x2c   : > { %s878_s7 = scalar_lea.vmem (!%p296_p8), [#allocation2], %s672_s6 }
  0x2e   : > { %v668_v20 = vld [vmem:[%s878_s7 + $0x38] sm:$0xff]  ;;  %v670_v21 = vld [vmem:[%s878_s7 + $0x48] sm:$0xff]  ;;  %v667_v22 = vld [vmem:[%s878_s7 + $0x30] sm:$0xff]  ;;  %v761_v24 = vmov 0   ;;  %vm432_vm0 = vcmask 261120   ;;  %s952_s30 = smov (!%p329_p9, %s606_s30), 3 }
  0x2f   : > { %436 = vmatpush.bf16.msra.mxu0 %v668_v20  ;;  %v659_v23 = vld [vmem:[%s941_s1 + $0x4] sm:$0xf]  ;;  %715 = vset.pattern.permute.xlu0 %v761_v24  ;;  %v612_v26 = vld [vmem:[%s941_s1 + $0x8] sm:$0xf0]  ;;  %v610_v38 = vld [vmem:[%s941_s1] sm:$0xf] }
  0x30   : > { %456 = vmatpush.bf16.msra.mxu1 %v670_v21  ;;  %v669_v25 = vld [vmem:[%s878_s7 + $0x40] sm:$0xff]  ;;  %716 = vset.pattern.permute.xlu1 %v761_v24  ;;  %v666_v29 = vld [vmem:[%s878_s7 + $0x28] sm:$0xff]  ;;  %v615_v30 = vor.u32 %v659_v23, %v612_v26  ;;  %v664_v34 = vld [vmem:[%s878_s7 + $0x18] sm:$0xff]  ;;  %s607_s5 = sshll.u32 %s952_s30, 3  ;;  %v762_v47 = vmov 0.0  }
  0x31   : > { %v466_v27 = vld [vmem:[%s942_s2] sm:$0xff]  ;;  %v467_v31 = vld [vmem:[%s942_s2 + $0x8] sm:$0xff]  ;;  %s918_s8 = scalar_lea.vmem %s944_s4, %s607_s5 }
  0x32   : > { %470 = vperm.xlu0 %715, %v466_v27   ;;  %v506_v28 = vld [vmem:[%s943_s3] sm:$0xff]  ;;  %v507_v33 = vld [vmem:[%s943_s3 + $0x8] sm:$0xff]  ;;  %339 = vst [vmem:[%s918_s8] sm:$0xff] %v762_v47 }
  0x33   : > { %510 = vperm.xlu1 %716, %v506_v28   ;;  %437 = vmatpush.bf16.msra.mxu0 %v667_v22  ;;  %v665_v32 = vld [vmem:[%s878_s7 + $0x20] sm:$0xff]  ;;  %v663_v35 = vld [vmem:[%s878_s7 + $0x10] sm:$0xff]  ;;  %v662_v36 = vld [vmem:[%s878_s7 + $0x8] sm:$0xff]  ;;  %340 = vst [vmem:[%s918_s8 + $0x8] sm:$0xff] %v762_v47 }
  0x34   : > { %457 = vmatpush.bf16.msra.mxu1 %v669_v25  ;;  %v661_v37 = vld [vmem:[%s878_s7] sm:$0xff]  ;;  %v660_v39 = vld [vmem:[%s941_s1 + $0x4] sm:$0xf0] }
  0x35   : > { %v611_v40 = vor.u32 %v660_v39, %v610_v38 }
  0x37   : > { %438 = vmatpush.bf16.msra.mxu0 %v666_v29  ;;  %656 = vmatmul.msk.bf16.vlgmr.msra.gmra.mxu1 %vm432_vm0, %v615_v30 }
  0x39   : > { %v504_v14 = vld [vmem:[%s918_s8] sm:$0xff] }
  0x3a   : > { %475 = vperm.xlu0 %715, %v467_v31  }
  0x3b   : > { %515 = vperm.xlu1 %716, %v507_v33   ;;  %439 = vmatpush.bf16.msra.mxu0 %v665_v32 }
  0x3f   : > { %440 = vmatpush.bf16.msra.mxu0 %v664_v34 }
  0x43   : > { %441 = vmatpush.bf16.msra.mxu0 %v663_v35 }
  0x47   : > { %442 = vmatpush.bf16.msra.mxu0 %v662_v36 }
  0x4b   : > { %443 = vmatpush.bf16.msra.mxu0 %v661_v37 }
  0x4e   : > { %444 = vmatmul.bf16.vlgmr.msra.gmra.mxu0 %v611_v40 }
  0xa4   : > { %v471_v44 = vpop.permute.xlu0 %470 }
  0xa5   : > { %v511_v0 = vpop.permute.xlu1 %510 }
  0xac   : > { %v476_v52 = vpop.permute.xlu0 %475 }
  0xad   : > { %v516_v11 = vpop.permute.xlu1 %515 }
  0xb4   : > { %v459_v41 = vpop.f32.mrf.mxu1 }
  0xbc   : > { %v461_v48 = vpop.f32.mrf.mxu1 }
  0xcb   : > { %v445_v42 = vpop.f32.mrf.mxu0 }
  0xcc   : > { %v460_v43 = vadd.f32 %v459_v41, %v445_v42 }
  0xce   : > { %v464_v45 = vmul.f32 %v460_v43, %v460_v43 }
  0xd0   : > { %v478_v46 = vadd.f32 %v471_v44, %v464_v45 }
  0xd2   : > { %717 = vrsqrt.f32 %v478_v46  ;;  %vm487_vm1 = vcmp.eq.f32.partialorder %v478_v46, inf  ;;  %v490_v1 = vand.u32 2147483648, %v478_v46  ;;  %vm489_vm2 = vcmp.eq.f32.partialorder %v478_v46, 0.0 }
  0xd3   : > { %v447_v49 = vpop.f32.mrf.mxu0 }
  0xd4   : > { %v462_v50 = vadd.f32 %v461_v48, %v447_v49 }
  0xd6   : > { %v465_v51 = vmul.f32 %v462_v50, %v462_v50 }
  0xd8   : > { %v718_v53 = vpop.eup %717  ;;  %v479_v54 = vadd.f32 %v476_v52, %v465_v51 }
  0xd9   : > { %v481_v55 = vmul.f32 %v718_v53, %v478_v46 }
  0xda   : > { %719 = vrsqrt.f32 %v479_v54  ;;  %vm499_vm3 = vcmp.eq.f32.partialorder %v479_v54, inf  ;;  %v502_v9 = vand.u32 2147483648, %v479_v54  ;;  %vm501_vm4 = vcmp.eq.f32.partialorder %v479_v54, 0.0 }
  0xdb   : > { %v482_v56 = vmul.f32 %v718_v53, %v481_v55 }
  0xdd   : > { %v483_v57 = vmul.f32 0.5, %v482_v56 }
  0xdf   : > { %v484_v58 = vsub.f32 1.5, %v483_v57 }
  0xe0   : > { %v720_v59 = vpop.eup %719 }
  0xe1   : > { %v493_v60 = vmul.f32 %v720_v59, %v479_v54  ;;  %v485_v61 = vmul.f32 %v718_v53, %v484_v58 }
  0xe3   : > { %v494_v62 = vmul.f32 %v720_v59, %v493_v60  ;;  %v486_v63 = vmul.f32 %v485_v61, %v478_v46 }
  0xe5   : > { %v495_v2 = vmul.f32 0.5, %v494_v62  ;;  %v488_v3 = vsel %vm487_vm1, %v478_v46, %v486_v63 }
  0xe6   : > { %v491_v4 = vsel %vm489_vm2, %v490_v1, %v488_v3 }
  0xe7   : > { %v496_v5 = vsub.f32 1.5, %v495_v2  ;;  %v518_v6 = vmul.f32 %v511_v0, %v491_v4 }
  0xe9   : > { %v497_v7 = vmul.f32 %v720_v59, %v496_v5  ;;  %520 = vadd.xlane.f32.xlu2 %v518_v6 }
  0xeb   : > { %v498_v8 = vmul.f32 %v497_v7, %v479_v54 }
  0xed   : > { %v500_v10 = vsel %vm499_vm3, %v479_v54, %v498_v8 }
  0xee   : > { %v503_v12 = vsel %vm501_vm4, %v502_v9, %v500_v10 }
  0xef   : > { %v519_v13 = vmul.f32 %v516_v11, %v503_v12 }
  0xf1   : > { %522 = vadd.xlane.f32.xlu2 %v519_v13 }
 0x15c   : > { %v521_v15 = vpop.xlane.xlu2 %520 }
 0x15d   : > { %v524_v16 = vadd.f32 %v521_v15, %v504_v14 }
 0x15f   : > { %526 = vst [vmem:[%s918_s8] sm:$0xff] %v524_v16 }
 0x164   : > { %v523_v17 = vpop.xlane.xlu2 %522 }
 0x165   : > { %527 = vst [vmem:[%s918_s8 + $0x8] sm:$0xff] %v523_v17 }
 0x166 PF: > { %s14_s19 = sadd.s32 1, %s759_s19   ;;  %s945_s15 = smov %s747_s16 }
 0x167   : > { %p11_p10 = scmp.ge.s32.totalorder %s14_s19, 4   ;;  %s946_s16 = smov %s823_s23 }
 0x168   : > { %s947_s17 = smov %s755_s18  ;;  %s948_s18 = smov %s950_s20 }
 0x169   :  { %13 = sbr.rel (!%p11_p10) target bundleno = 3 (0x3), region = 116 }

</bundles_post_ra>
